<compile_context>
chip_gen: v7x
topology: tpu7x:2x2x1
jax: 0.10.0
libtpu: 0.0.40
codegen_flags: <defaults>
</compile_context>

<pallas_src>
import functools

import jax
import jax.numpy as jnp
import numpy as np
from jax.experimental import pallas as pl
from jax.experimental.pallas import tpu as pltpu


def _round_up(x: int, m: int) -> int:
    return (x + m - 1) // m * m


def _default_vmem_limit() -> int:
    """~80% of physical VMEM (v5e/v6e: ~102 MiB, v7x: ~51 MiB)."""
    try:
        info = pltpu.get_tpu_info()
        cap = getattr(info, "vmem_capacity_bytes", None)
        if cap:
            return int(cap * 0.8)
    except Exception:
        pass
    return 48 * 1024 * 1024  # conservative fallback (safe on v7x's 64 MiB)


# ---------------------------------------------------------------------------
# Prologue: per-row-tile L2 normalize, cast to matmul dtype, write transposed.
# ---------------------------------------------------------------------------
def _normalize_transpose_kernel(feat_ref, fnT_ref, *, out_dtype):
    f = feat_ref[...].astype(jnp.float32)                     # (tb_p, D_pad)
    ssq = jnp.sum(f * f, axis=1, keepdims=True)
    # F.normalize semantics: x / max(||x||, 1e-12) == x * rsqrt(max(ssq, 1e-24))
    fn = (f * jax.lax.rsqrt(jnp.maximum(ssq, 1e-24))).astype(out_dtype)
    fnT_ref[...] = fn.T                                       # cast-then-transpose


# ---------------------------------------------------------------------------
# Main tile kernel: one TB-row block of the loss.
# ---------------------------------------------------------------------------
def _loss_tile_kernel(feat_ref, fnT_ref, lab_col_ref, lab_row_ref, out_ref,
                      *, temperature: float, eps: float, true_b: int,
                      out_dtype):
    tb = feat_ref.shape[0]
    bp = lab_row_ref.shape[1]

    # Fused LHS normalization (raw f32 row tile -> normalized matmul dtype).
    f = feat_ref[...].astype(jnp.float32)                     # (tb, D_pad)
    ssq = jnp.sum(f * f, axis=1, keepdims=True)
    lhs = (f * jax.lax.rsqrt(jnp.maximum(ssq, 1e-24))).astype(out_dtype)

    # (tb, D) x (D, B_pad) NN matmul on the MXU, f32 accumulation.
    sim = jnp.dot(lhs, fnT_ref[...], preferred_element_type=jnp.float32)
    sim = sim * (1.0 / temperature)                           # (tb, B_pad)
    exp_sim = jnp.exp(sim)

    lab_col = lab_col_ref[...]                                # (tb, 1)  int32
    lab_row = lab_row_ref[...]                                # (1, B_pad) int32
    eq = lab_col == lab_row                                   # (tb, B_pad) bool

    # Narrow iotas; comparisons broadcast (no (tb, B_pad) int32 temporaries).
    row_g = pl.program_id(0) * tb + jax.lax.broadcasted_iota(
        jnp.int32, (tb, 1), 0)                                # (tb, 1)
    col_g = jax.lax.broadcasted_iota(jnp.int32, (1, bp), 1)   # (1, B_pad)
    valid_row = row_g < true_b                                # (tb, 1)
    valid_col = col_g < true_b                                # (1, B_pad)

    pos = eq & (row_g != col_g) & valid_col & valid_row       # off-diag same-label
    neg = jnp.logical_not(eq) & valid_col                     # diff-label, non-pad

    # denominator_i = sum_j exp(sim_ij) over negatives + eps
    denom = jnp.sum(jnp.where(neg, exp_sim, 0.0),
                    axis=1, keepdims=True) + eps              # (tb, 1)

    # -log( exp_sim / (denom + exp_sim) + eps )  with EUP approx reciprocal
    ratio = exp_sim * pl.reciprocal(denom + exp_sim, approx=True)
    loss_elt = -jnp.log(ratio + eps)
    loss_row = jnp.sum(jnp.where(pos, loss_elt, 0.0),
                       axis=1, keepdims=True)                 # (tb, 1)

    n_pos = jnp.sum(jnp.where(pos, 1.0, 0.0), axis=1, keepdims=True)
    row_has = n_pos > 0.0
    per_row = jnp.where(row_has, loss_row / jnp.maximum(n_pos, 1.0), 0.0)

    tile_loss = jnp.sum(per_row)
    tile_cnt = jnp.sum(row_has.astype(jnp.float32))

    # Lane-dense partial block: [0,0,0] = loss sum, [0,0,1] = valid-row count.
    sub = jax.lax.broadcasted_iota(jnp.int32, (1, 8, 128), 1)
    lane = jax.lax.broadcasted_iota(jnp.int32, (1, 8, 128), 2)
    out_ref[...] = jnp.where(
        (sub == 0) & (lane == 0), tile_loss,
        jnp.where((sub == 0) & (lane == 1), tile_cnt, 0.0))


# ---------------------------------------------------------------------------
# Wrapper
# ---------------------------------------------------------------------------
def simplified_contrastive_loss(features, labels,
                                temperature: float = 0.07, eps: float = 1e-8,
                                matmul_dtype=jnp.bfloat16,
                                block_rows: int = 128):
    """Pallas TPU implementation of SimplifiedContrastiveLoss.forward."""
    B, D = features.shape
    if B < 2:  # static shape check, mirrors the PyTorch early-return
        return jnp.float32(0.0)

    # bf16 packs 16 rows per sublane group -> require 16-row granularity.
    sub_mult = 16 if jnp.dtype(matmul_dtype).itemsize == 2 else 8
    assert block_rows % sub_mult == 0, (
        f"block_rows must be a multiple of {sub_mult} for {matmul_dtype}")

    D_pad = _round_up(D, 128)
    if B <= block_rows:
        B_pad = _round_up(B, sub_mult)
        tb = B_pad
    else:
        B_pad = _round_up(B, block_rows)
        tb = block_rows
    n_pad = B_pad - B
    num_tiles = B_pad // tb

    feat_p = jnp.pad(features.astype(jnp.float32),
                     ((0, n_pad), (0, D_pad - D)))
    lab_p = jnp.pad(labels.astype(jnp.int32).reshape(-1), (0, n_pad))
    lab_col = lab_p.reshape(B_pad, 1)
    lab_row = lab_p.reshape(1, B_pad)

    vmem_limit = _default_vmem_limit()

    # --- prologue: row-tiled normalize + cast + transpose -> fnT (D, B) ----
    # Transposed output block's lane dim must be a multiple of 128 or == B_pad.
    if B_pad > 256 and B_pad % 256 == 0:
        tb_p = 256
    elif B_pad > 128 and B_pad % 128 == 0:
        tb_p = 128
    else:
        tb_p = B_pad

    fnT = pl.pallas_call(
        functools.partial(_normalize_transpose_kernel, out_dtype=matmul_dtype),
        out_shape=jax.ShapeDtypeStruct((D_pad, B_pad), matmul_dtype),
        grid=(B_pad // tb_p,),
        in_specs=[pl.BlockSpec((tb_p, D_pad), lambda i: (i, 0))],
        out_specs=pl.BlockSpec((D_pad, tb_p), lambda i: (0, i)),
        compiler_params=pltpu.CompilerParams(
            dimension_semantics=("parallel",),
            vmem_limit_bytes=vmem_limit),
    )(feat_p)

    # --- main row-tiled kernel ---------------------------------------------
    kernel = functools.partial(_loss_tile_kernel,
                               temperature=temperature, eps=eps,
                               true_b=B, out_dtype=matmul_dtype)
    partials = pl.pallas_call(
        kernel,
        out_shape=jax.ShapeDtypeStruct((num_tiles, 8, 128), jnp.float32),
        grid=(num_tiles,),
        in_specs=[
            # raw f32 query rows (normalized in-kernel), tiled
            pl.BlockSpec((tb, D_pad), lambda i: (i, 0)),
            # pre-transposed normalized contrast operand, resident, 1-buffered
            pl.BlockSpec((D_pad, B_pad), lambda i: (0, 0),
                         pipeline_mode=pl.Buffered(1)),
            # labels (column vector), tiled
            pl.BlockSpec((tb, 1), lambda i: (i, 0)),
            # labels (row vector), resident, 1-buffered
            pl.BlockSpec((1, B_pad), lambda i: (0, 0),
                         pipeline_mode=pl.Buffered(1)),
        ],
        out_specs=pl.BlockSpec((1, 8, 128), lambda i: (i, 0, 0)),
        compiler_params=pltpu.CompilerParams(
            dimension_semantics=("parallel",),   # v7x: shard tiles over 2 TCs
            vmem_limit_bytes=vmem_limit),
    )(feat_p, fnT, lab_col, lab_row)

    loss_total = jnp.sum(partials[:, 0, 0])
    cnt = jnp.sum(partials[:, 0, 1])
    return jnp.where(cnt > 0.0, loss_total / jnp.maximum(cnt, 1.0),
                     jnp.float32(0.0))


def contrastive_loss(features, labels, temperature: float = 0.07,
                     eps: float = 1e-8, **kwargs):
    """ContrastiveLoss.forward (use_simplified=True path) -> dict of losses."""
    if features.ndim == 3:  # [B, n_views, D] -> [B*n_views, D], repeat labels
        b, v, d = features.shape
        features = features.reshape(b * v, d)
        labels = jnp.repeat(labels, v)
    loss = simplified_contrastive_loss(features, labels,
                                       temperature=temperature, eps=eps,
                                       **kwargs)
    return {"total": loss, "supcon": loss}


# ---------------------------------------------------------------------------
# Pure-JAX reference mirroring the PyTorch module.
# ---------------------------------------------------------------------------
def _reference_loss(features, labels, temperature=0.07, eps=1e-8,
                    matmul_dtype=None):
    B = features.shape[0]
    f = features.astype(jnp.float32)
    f = f / jnp.maximum(jnp.linalg.norm(f, axis=1, keepdims=True), 1e-12)
    if matmul_dtype is not None:
        f = f.astype(matmul_dtype)
    sim = jnp.dot(f, f.T, preferred_element_type=jnp.float32) / temperature
    lab = labels.reshape(-1, 1)
    pos = (lab == lab.T).astype(jnp.float32)
    off = 1.0 - jnp.eye(B, dtype=jnp.float32)
    pos = pos * off
    neg = (1.0 - pos) * off
    exp_sim = jnp.exp(sim)
    den = (exp_sim * neg).sum(axis=1, keepdims=True) + eps
    num = exp_sim * pos
    lpp = -jnp.log(num / (den + num) + eps)
    npos = pos.sum(axis=1)
    row_mask = npos > 0
    loss_row = (lpp * pos).sum(axis=1)
    per = jnp.where(row_mask, loss_row / jnp.maximum(npos, 1.0), 0.0)
    cnt = row_mask.astype(jnp.float32).sum()
    return jnp.where(cnt > 0, per.sum() / jnp.maximum(cnt, 1.0), 0.0)


if __name__ == "__main__":
    key = jax.random.PRNGKey(0)
    k1, k2, k3, k4 = jax.random.split(key, 4)

    # Case 1: default bf16 MXU path, single tile (B=8 -> padded to 16, D=32 -> 128).
    B, D = 8, 32
    feats = jax.random.normal(k1, (B, D), dtype=jnp.float32)
    labs = jax.random.randint(k2, (B,), 0, 3, dtype=jnp.int32)

    loss = jax.block_until_ready(simplified_contrastive_loss(feats, labs))
    ref_bf16 = jax.block_until_ready(
        _reference_loss(feats, labs, matmul_dtype=jnp.bfloat16))
    ref_f32 = jax.block_until_ready(_reference_loss(feats, labs))

    if not np.allclose(np.asarray(loss), np.asarray(ref_bf16),
                       rtol=1e-2, atol=2e-3):
        raise AssertionError(f"bf16-matched mismatch: pallas={loss} ref={ref_bf16}")
    if not np.allclose(np.asarray(loss), np.asarray(ref_f32),
                       rtol=1.5e-1, atol=5e-2):
        raise AssertionError(f"f32-semantic mismatch: pallas={loss} ref={ref_f32}")

    # Case 2: f32 matmul path, row padding (20 -> 24) and a multi-tile grid
    # (block_rows=8 just to exercise the grid at demo size; f32 allows % 8).
    B2, D2 = 20, 40
    feats2 = jax.random.normal(k3, (B2, D2), dtype=jnp.float32)
    labs2 = jax.random.randint(k4, (B2,), 0, 4, dtype=jnp.int32)

    loss2 = jax.block_until_ready(
        simplified_contrastive_loss(feats2, labs2,
                                    matmul_dtype=jnp.float32, block_rows=8))
    ref2 = jax.block_until_ready(_reference_loss(feats2, labs2))
    if not np.allclose(np.asarray(loss2), np.asarray(ref2),
                       rtol=1e-2, atol=2e-3):
        raise AssertionError(f"tiled f32 mismatch: pallas={loss2} ref={ref2}")

    # Case 3: dict wrapper + 3-D [B, n_views, D] input path.
    d = jax.block_until_ready(
        contrastive_loss(feats.reshape(4, 2, D), labs[:4])["total"])
    _ = np.asarray(d)

    print("KERNEL_OK")
</pallas_src>

<mosaic_0001>
module attributes {stable_mosaic.version = 11 : i64} {
  func.func @_normalize_transpose_kernel(%arg0: i32, %arg1: memref<16x128xf32, #tpu.memory_space<vmem>>, %arg2: memref<128x16xbf16, #tpu.memory_space<vmem>>) attributes {dimension_semantics = [#tpu.dimension_semantics<parallel>], iteration_bounds = array<i64: 1>, scalar_prefetch = 0 : i64, scratch_operands = 0 : i64, tpu.core_type = #tpu.core_type<tc>, window_params = [{transform_indices = @transform_0, window_bounds = array<i64: 16, 128>}, {transform_indices = @transform_1, window_bounds = array<i64: 128, 16>}]} {
    %c0 = arith.constant 0 : index
    %c0_0 = arith.constant 0 : index
    %0 = vector.load %arg1[%c0, %c0_0] : memref<16x128xf32, #tpu.memory_space<vmem>>, vector<16x128xf32>
    %1 = arith.mulf %0, %0 : vector<16x128xf32>
    %cst = arith.constant dense<0.000000e+00> : vector<16xf32>
    %2 = vector.multi_reduction <add>, %1, %cst [1] : vector<16x128xf32> to vector<16xf32>
    %3 = vector.shape_cast %2 : vector<16xf32> to vector<16x1xf32>
    %cst_1 = arith.constant 1.000000e-24 : f32
    %4 = vector.broadcast %cst_1 : f32 to vector<16x1xf32>
    %5 = arith.maximumf %3, %4 : vector<16x1xf32>
    %6 = math.rsqrt %5 : vector<16x1xf32>
    %7 = vector.broadcast %6 : vector<16x1xf32> to vector<16x128xf32>
    %8 = arith.mulf %0, %7 : vector<16x128xf32>
    %9 = arith.truncf %8 : vector<16x128xf32> to vector<16x128xbf16>
    %10 = tpu.transpose %9, [1, 0] : vector<16x128xbf16> -> vector<128x16xbf16>
    %c0_2 = arith.constant 0 : index
    %c0_3 = arith.constant 0 : index
    %11 = vector.load %arg2[%c0_2, %c0_3] : memref<128x16xbf16, #tpu.memory_space<vmem>>, vector<128x16xbf16>
    tpu.vector_store %arg2[%c0_2, %c0_3], %10 {strides = array<i32>} : memref<128x16xbf16, #tpu.memory_space<vmem>>, vector<128x16xbf16>,
    return
  }
  func.func @transform_0(%arg0: i32) -> (i32, i32) {
    %c0_i32 = arith.constant 0 : i32
    %c0_i32_0 = arith.constant 0 : i32
    return %arg0, %c0_i32 : i32, i32
  }
  func.func @transform_1(%arg0: i32) -> (i32, i32) {
    %c0_i32 = arith.constant 0 : i32
    %c0_i32_0 = arith.constant 0 : i32
    return %c0_i32, %arg0 : i32, i32
  }
}

</mosaic_0001>

<bundles_post_ra>
// kernel: tpu_custom_call.1
= control target key start
LH: loop header
LB: loop body
LE: loop exit
PB: predicated region body
PF: predicated region fallthrough
CT: control target
= control target key end

     0   :  { %6 = vsyncpa [#allocation3], 0  ;;  %s180_s6 = smov [#allocation2]   ;;  %s269_s0 = inlined_call_operand.hbm [shape: f32[16,128], index: 0, kind: input, shape index: {}]   ;;  %s270_s1 = inlined_call_operand.vmem [shape: bf16[128,16], index: 1, kind: output, shape index: {}]  }
   0x1   :  { %s12_s7 = sshll.u32 %s180_s6, 4  ;;  %s156_s10 = scalar_lea.hbm %s269_s0, 256  ;;  %s13_s7 = int_to_ptr.vmem [resolvable:$true] %s12_s7 }
   0x2   :  { %p157_p0 = scmp.ne.s32.totalorder %s269_s0, %s156_s10  ;;  %p160_p1 = scmp.lt.u32.totalorder %s156_s10, %s269_s0 }
   0x4   :  { %p162_p2 = pnand %p160_p1, %p157_p0 }
   0x6   :  { %165 = shalt.err (!%p162_p2)
}
   0x7   :  { %s166_s15 = scalar_lea.vmem %s13_s7, 256  ;;  %p171_p4 = scmp.lt.s32.totalorder %s13_s7, %s13_s7 }
   0x8   :  { %p167_p3 = scmp.ne.s32.totalorder %s13_s7, %s166_s15  ;;  %p172_p5 = scmp.lt.s32.totalorder %s166_s15, %s166_s15 }
   0xa   :  { %p173_p6 = por %p172_p5, %p171_p4 }
   0xc   :  { %p174_p7 = pnand %p173_p6, %p167_p3 }
   0xe   :  { %177 = shalt.err (!%p174_p7)
}
   0xf   :  { %s181_s16 = smov 128   ;;  %s182_s17 = smov 8  }
  0x10   :  { %18 = dma.hbm_to_vmem [thread:$0]  %s269_s0, 256, %s13_s7, [#allocation3], %s181_s16, %s181_s16, %s182_s17  }
  0x11   :  { %178 = dma.done.wait [#allocation3], 256  }
  0x12   :  { %179 = vsyncadd [#allocation3], 4294967040  ;;  %v23_v0 = vld [vmem:[#allocation2] sm:$0xff]  ;;  %v24_v1 = vld [vmem:[#allocation2 + $0x8] sm:$0xff]  ;;  %vm110_vm0 = vcmask 125952  }
  0x13   :  { %v25_v2 = vmul.f32 %v23_v0, %v23_v0  ;;  %v26_v3 = vmul.f32 %v24_v1, %v24_v1 }
  0x15   :  { %27 = vadd.xlane.f32.xlu0 %v25_v2 }
  0x19   :  { %29 = vadd.xlane.f32.xlu0 %v26_v3 }
  0xa2   :  { %v28_v4 = vpop.xlane.xlu0 %27 }
  0xa3   :  { %v31_v5 = vmax.f32 %v28_v4, 1e-24 }
  0xa5   :  { %152 = vrsqrt.f32 %v31_v5 }
  0xa6   :  { %v30_v6 = vpop.xlane.xlu0 %29 }
  0xa7   :  { %v32_v7 = vmax.f32 %v30_v6, 1e-24 }
  0xa9   :  { %154 = vrsqrt.f32 %v32_v7 }
  0xaf   :  { %v153_v8 = vpop.eup %152 }
  0xb0   :  { %v35_v10 = vmul.f32 %v153_v8, %v23_v0 }
  0xb3   :  { %v155_v9 = vpop.eup %154 }
  0xb4   :  { %v36_v11 = vmul.f32 %v155_v9, %v24_v1 }
  0xb6   :  { %v37_v12 = vpack.c.bf16 %v36_v11, %v35_v10 }
  0xb8   :  { %38 = vxpose.xlu1.c.b16.start.end [1/1] (short) %v37_v12, 128 }
 0x11e   :  { %v46_v13 = vpop.trf.xlu1 }
 0x11f   :  { %v132_v14 = vcombine.low %v46_v13, %v46_v13  ;;  %v133_v15 = vcombine.high %v46_v13, %v46_v13 }
 0x121   :  { %111 = vst.msk [vmem:[%s270_s1] sm:$0xf] %vm110_vm0, %v132_v14  ;;  %112 = vst.msk [vmem:[%s270_s1 + $0x4] sm:$0xf] %vm110_vm0, %v133_v15 }
 0x122   :  { %v47_v16 = vpop.trf.xlu1 }
 0x123   :  { %v134_v17 = vcombine.low %v47_v16, %v47_v16  ;;  %v135_v18 = vcombine.high %v47_v16, %v47_v16 }
 0x125   :  { %113 = vst.msk [vmem:[%s270_s1 + $0x8] sm:$0xf] %vm110_vm0, %v134_v17  ;;  %114 = vst.msk [vmem:[%s270_s1 + $0xc] sm:$0xf] %vm110_vm0, %v135_v18 }
 0x126   :  { %v48_v19 = vpop.trf.xlu1 }
 0x127   :  { %v136_v20 = vcombine.low %v48_v19, %v48_v19  ;;  %v137_v21 = vcombine.high %v48_v19, %v48_v19 }
 0x129   :  { %115 = vst.msk [vmem:[%s270_s1 + $0x10] sm:$0xf] %vm110_vm0, %v136_v20  ;;  %116 = vst.msk [vmem:[%s270_s1 + $0x14] sm:$0xf] %vm110_vm0, %v137_v21 }
 0x12a   :  { %v49_v22 = vpop.trf.xlu1 }
 0x12b   :  { %v138_v23 = vcombine.low %v49_v22, %v49_v22  ;;  %v139_v24 = vcombine.high %v49_v22, %v49_v22 }
 0x12d   :  { %117 = vst.msk [vmem:[%s270_s1 + $0x18] sm:$0xf] %vm110_vm0, %v138_v23  ;;  %118 = vst.msk [vmem:[%s270_s1 + $0x1c] sm:$0xf] %vm110_vm0, %v139_v24 }
 0x12e   :  { %v50_v25 = vpop.trf.xlu1 }
 0x12f   :  { %v140_v26 = vcombine.low %v50_v25, %v50_v25  ;;  %v141_v27 = vcombine.high %v50_v25, %v50_v25 }
 0x131   :  { %119 = vst.msk [vmem:[%s270_s1 + $0x20] sm:$0xf] %vm110_vm0, %v140_v26  ;;  %120 = vst.msk [vmem:[%s270_s1 + $0x24] sm:$0xf] %vm110_vm0, %v141_v27 }
 0x132   :  { %v51_v28 = vpop.trf.xlu1 }
 0x133   :  { %v142_v29 = vcombine.low %v51_v28, %v51_v28  ;;  %v143_v30 = vcombine.high %v51_v28, %v51_v28 }
 0x135   :  { %121 = vst.msk [vmem:[%s270_s1 + $0x28] sm:$0xf] %vm110_vm0, %v142_v29  ;;  %122 = vst.msk [vmem:[%s270_s1 + $0x2c] sm:$0xf] %vm110_vm0, %v143_v30 }
 0x136   :  { %v52_v31 = vpop.trf.xlu1 }
 0x137   :  { %v144_v32 = vcombine.low %v52_v31, %v52_v31  ;;  %v145_v33 = vcombine.high %v52_v31, %v52_v31 }
 0x139   :  { %123 = vst.msk [vmem:[%s270_s1 + $0x30] sm:$0xf] %vm110_vm0, %v144_v32  ;;  %124 = vst.msk [vmem:[%s270_s1 + $0x34] sm:$0xf] %vm110_vm0, %v145_v33 }
 0x13a   :  { %v53_v34 = vpop.trf.xlu1 }
 0x13b   :  { %v146_v35 = vcombine.low %v53_v34, %v53_v34  ;;  %v147_v36 = vcombine.high %v53_v34, %v53_v34 }
 0x13d   :  { %125 = vst.msk [vmem:[%s270_s1 + $0x38] sm:$0xf] %vm110_vm0, %v146_v35  ;;  %126 = vst.msk [vmem:[%s270_s1 + $0x3c] sm:$0xf] %vm110_vm0, %v147_v36 }
 0x13e   :  { %131 = vsyncpa [#allocation3], 1 }

</bundles_post_ra>
